<compile_context>
chip_gen: v7x
topology: tpu7x:2x2x1
jax: 0.10.0
libtpu: 0.0.40
codegen_flags: <defaults>
</compile_context>

<pallas_src>
import functools

import jax
import jax.numpy as jnp
from jax.experimental import pallas as pl
from jax.experimental.pallas import tpu as pltpu

_LANES = 128
_SUB = 8                            # f32 sublane tile
_MAX_BLOCK_ELEMS = 2048 * _LANES    # ~1 MiB f32 per input per pipeline buffer
_MIN_BLOCK_ELEMS = 256 * _LANES     # amortize ~0.35 us per grid step


def _cdiv(a, b):
    return -(-a // b)


def _round_up(a, m):
    return _cdiv(a, m) * m


def _sublane_mult(dtype):
    # (8,128) tiles for 4-byte dtypes, (16,128) for bf16, (32,128) for 1-byte.
    itemsize = jnp.dtype(dtype).itemsize
    return 8 * max(1, 4 // itemsize)


def _wbce_kernel(params_ref, x_ref, t_ref, o_ref, *, block0, n_valid_last,
                 group8):
    """One grid step: weighted BCE on one block + VPU-only partial reduction."""
    pos_w = params_ref[0]
    neg_w = params_ref[1]
    eps = params_ref[2]

    x = x_ref[...].astype(jnp.float32)
    t = t_ref[...].astype(jnp.float32)

    # clamp(inputs, eps, 1 - eps)
    x = jnp.clip(x, eps, 1.0 - eps)
    # -(pos_w*t*log(x) + neg_w*(1-t)*log(1-x))
    #   == nl + t*((-pos_w)*log(x) - nl),   nl = (-neg_w)*log(1-x)
    nl = (-neg_w) * jnp.log(1.0 - x)
    loss = nl + t * ((-pos_w) * jnp.log(x) - nl)

    if n_valid_last is not None:
        # Only the last block can contain out-of-bounds rows / slices.  Use a
        # select (not a multiply) so NaN/Inf from pad data is discarded.
        i = pl.program_id(0)
        nb = pl.num_programs(0)
        limit = jnp.where(i == nb - 1, n_valid_last, block0)
        axis0 = jax.lax.broadcasted_iota(jnp.int32, loss.shape, 0)
        loss = jnp.where(axis0 < limit, loss, 0.0)

    if group8:
        # (bm, W) -> (bm//8, 8, W) matches the f32 vreg sublane tiling, so the
        # axis-0 sum is pure vreg-wise VALU adds (no cross-lane / XLU work).
        bm, w = loss.shape
        part = loss.reshape(bm // _SUB, _SUB, w).sum(axis=0)        # (8, W)
    elif loss.ndim == 2:
        part = loss.sum(axis=0, keepdims=True)                      # (1, W)
    else:
        part = loss.sum(axis=0)                                     # (H, W)
    o_ref[...] = part[None]


def weighted_bce_loss(inputs, targets, pos_weight=1.0, neg_weight=1.0,
                      eps=1e-7):
    """Pallas equivalent of WeightedBCELoss.forward; returns a scalar f32."""
    if inputs.shape != targets.shape:
        targets = jnp.broadcast_to(targets, inputs.shape)

    n = 1
    for d in inputs.shape:
        n *= int(d)
    if n == 0:
        return jnp.float32(jnp.nan)   # mean of empty tensor (matches torch)

    row_mult = max(_sublane_mult(inputs.dtype), _sublane_mult(targets.dtype))
    shape = inputs.shape

    # ---- choose a zero-copy canonical view --------------------------------
    if inputs.ndim <= 1:
        x2, t2 = inputs.reshape(1, -1), targets.reshape(1, -1)
    elif inputs.ndim == 2:
        x2, t2 = inputs, targets
    elif shape[-2] % row_mult == 0:
        # Merging all leading dims (incl. second-to-last) into the row axis
        # keeps the (sublane, lane) tiling intact -> metadata-only reshape.
        x2 = inputs.reshape(-1, shape[-1])
        t2 = targets.reshape(-1, shape[-1])
    else:
        x2 = t2 = None                # fall through to the 3-D slice path

    params = jnp.array([pos_weight, neg_weight, eps], dtype=jnp.float32)
    smem_spec = pl.BlockSpec(memory_space=pltpu.MemorySpace.SMEM)
    cparams = pltpu.CompilerParams(dimension_semantics=("parallel",))

    if x2 is not None:
        # ---- 2-D row path: blocks of (bm, W) rows --------------------------
        M, W = int(x2.shape[0]), int(x2.shape[1])
        max_rows = max(row_mult,
                       (_MAX_BLOCK_ELEMS // max(W, 1)) // row_mult * row_mult)
        floor_rows = min(max_rows,
                         max(row_mult,
                             _round_up(_cdiv(_MIN_BLOCK_ELEMS, max(W, 1)),
                                       row_mult)))
        split_rows = _round_up(_cdiv(M, 2), row_mult)  # >=2 blocks (v7x megacore)
        bm = min(max_rows, max(floor_rows, split_rows))
        if bm >= M:
            bm, nb = M, 1
        else:
            nb = _cdiv(M, bm)
        n_valid_last = M - (nb - 1) * bm
        needs_mask = n_valid_last != bm
        group8 = (bm % _SUB) == 0
        gdim = _SUB if group8 else 1
        # TODO(synk): a single row with W of many millions of elements would
        # overflow VMEM; such shapes would need an extra lane-blocked grid axis.

        kernel = functools.partial(
            _wbce_kernel, block0=int(bm),
            n_valid_last=int(n_valid_last) if needs_mask else None,
            group8=group8)
        partials = pl.pallas_call(
            kernel,
            out_shape=jax.ShapeDtypeStruct((nb, gdim, W), jnp.float32),
            grid_spec=pltpu.PrefetchScalarGridSpec(
                num_scalar_prefetch=0,
                grid=(nb,),
                in_specs=[
                    smem_spec,
                    pl.BlockSpec((bm, W), lambda i: (i, 0)),
                    pl.BlockSpec((bm, W), lambda i: (i, 0)),
                ],
                out_specs=pl.BlockSpec((1, gdim, W), lambda i: (i, 0, 0)),
            ),
            compiler_params=cparams,
        )(params, x2, t2)
    else:
        # ---- 3-D slice path: blocks of (lb, H, W) whole trailing slices ----
        H, W = int(shape[-2]), int(shape[-1])
        L = n // (H * W)
        x3 = inputs.reshape(L, H, W)    # merges leading dims only: metadata-only
        t3 = targets.reshape(L, H, W)
        slice_elems = _round_up(H, _SUB) * _round_up(W, _LANES)  # padded VMEM
        max_sl = max(1, _MAX_BLOCK_ELEMS // slice_elems)
        floor_sl = min(max_sl, max(1, _cdiv(_MIN_BLOCK_ELEMS, slice_elems)))
        split_sl = _cdiv(L, 2)
        lb = min(max_sl, max(floor_sl, split_sl))
        if lb >= L:
            lb, nb = L, 1
        else:
            nb = _cdiv(L, lb)
        n_valid_last = L - (nb - 1) * lb
        needs_mask = n_valid_last != lb
        # TODO(synk): a single (H, W) slice larger than ~1-2 MiB of padded f32
        # would need blocking over H as well.

        kernel = functools.partial(
            _wbce_kernel, block0=int(lb),
            n_valid_last=int(n_valid_last) if needs_mask else None,
            group8=False)
        partials = pl.pallas_call(
            kernel,
            out_shape=jax.ShapeDtypeStruct((nb, H, W), jnp.float32),
            grid_spec=pltpu.PrefetchScalarGridSpec(
                num_scalar_prefetch=0,
                grid=(nb,),
                in_specs=[
                    smem_spec,
                    pl.BlockSpec((lb, H, W), lambda i: (i, 0, 0)),
                    pl.BlockSpec((lb, H, W), lambda i: (i, 0, 0)),
                ],
                out_specs=pl.BlockSpec((1, H, W), lambda i: (i, 0, 0)),
            ),
            compiler_params=cparams,
        )(params, x3, t3)

    return jnp.sum(partials) / jnp.float32(n)


def _reference(inputs, targets, pos_weight=1.0, neg_weight=1.0, eps=1e-7):
    x = jnp.clip(inputs.astype(jnp.float32), eps, 1.0 - eps)
    t = targets.astype(jnp.float32)
    return -(pos_weight * t * jnp.log(x)
             + neg_weight * (1.0 - t) * jnp.log(1.0 - x)).mean()


def _check(inputs, targets, pos_w, neg_w):
    loss = jax.block_until_ready(
        weighted_bce_loss(inputs, targets, pos_weight=pos_w, neg_weight=neg_w))
    ref = _reference(inputs, targets, pos_weight=pos_w, neg_weight=neg_w)
    assert jnp.allclose(loss, ref, rtol=1e-4, atol=1e-6), (loss, ref)


if __name__ == "__main__":
    key = jax.random.PRNGKey(0)
    k1, k2, k3, k4, k5, k6 = jax.random.split(key, 6)

    # Primary case: NCHW segmentation-style probabilities / binary masks.
    shape = (2, 4, 16, 16)
    x = jax.random.uniform(k1, shape, dtype=jnp.float32)
    tgt = (jax.random.uniform(k2, shape) > 0.5).astype(jnp.float32)
    _check(x, tgt, 2.0, 0.5)
    _check(x, tgt, 1.0, 1.0)          # new weights: SMEM scalars, no recompile

    # bf16 probabilities (halves HBM traffic; kernel casts to f32 internally).
    _check(x.astype(jnp.bfloat16), tgt, 1.0, 1.0)

    # Non-sublane-aligned trailing dims -> direct 3-D slice tiling (no copy).
    shape_odd = (3, 1, 7, 11)
    x_odd = jax.random.uniform(k3, shape_odd, dtype=jnp.float32)
    t_odd = (jax.random.uniform(k4, shape_odd) > 0.5).astype(jnp.float32)
    _check(x_odd, t_odd, 1.5, 0.75)

    # Multi-block case with a ragged last block (>=2 blocks for v7x megacore).
    shape_big = (1, 1, 2600, 128)
    x_big = jax.random.uniform(k5, shape_big, dtype=jnp.float32)
    t_big = (jax.random.uniform(k6, shape_big) > 0.5).astype(jnp.float32)
    _check(x_big, t_big, 1.0, 2.0)

    print("KERNEL_OK")
</pallas_src>

<mosaic_0001>
module attributes {stable_mosaic.version = 11 : i64} {
  func.func @_wbce_kernel(%arg0: i32, %arg1: memref<3xf32, #tpu.memory_space<smem>>, %arg2: memref<128x16xf32, #tpu.memory_space<vmem>>, %arg3: memref<128x16xf32, #tpu.memory_space<vmem>>, %arg4: memref<1x8x16xf32, #tpu.memory_space<vmem>>) attributes {dimension_semantics = [#tpu.dimension_semantics<parallel>], iteration_bounds = array<i64: 1>, scalar_prefetch = 0 : i64, scratch_operands = 0 : i64, tpu.core_type = #tpu.core_type<tc>, window_params = [{transform_indices = @transform_0, window_bounds = array<i64: 3>}, {transform_indices = @transform_1, window_bounds = array<i64: 128, 16>}, {transform_indices = @transform_2, window_bounds = array<i64: 128, 16>}, {transform_indices = @transform_3, window_bounds = array<i64: 1, 8, 16>}]} {
    %c0 = arith.constant 0 : index
    %0 = memref.load %arg1[%c0] : memref<3xf32, #tpu.memory_space<smem>>
    %c1 = arith.constant 1 : index
    %1 = memref.load %arg1[%c1] : memref<3xf32, #tpu.memory_space<smem>>
    %c2 = arith.constant 2 : index
    %2 = memref.load %arg1[%c2] : memref<3xf32, #tpu.memory_space<smem>>
    %c0_0 = arith.constant 0 : index
    %c0_1 = arith.constant 0 : index
    %3 = vector.load %arg2[%c0_0, %c0_1] : memref<128x16xf32, #tpu.memory_space<vmem>>, vector<128x16xf32>
    %c0_2 = arith.constant 0 : index
    %c0_3 = arith.constant 0 : index
    %4 = vector.load %arg3[%c0_2, %c0_3] : memref<128x16xf32, #tpu.memory_space<vmem>>, vector<128x16xf32>
    %cst = arith.constant 1.000000e+00 : f32
    %5 = arith.subf %cst, %2 : f32
    %6 = vector.broadcast %2 : f32 to vector<128x16xf32>
    %7 = arith.maximumf %6, %3 : vector<128x16xf32>
    %8 = vector.broadcast %5 : f32 to vector<128x16xf32>
    %9 = arith.minimumf %8, %7 : vector<128x16xf32>
    %cst_4 = arith.constant 0.000000e+00 : f32
    %10 = arith.subf %cst_4, %1 : f32
    %cst_5 = arith.constant 1.000000e+00 : f32
    %11 = vector.broadcast %cst_5 : f32 to vector<128x16xf32>
    %12 = arith.subf %11, %9 : vector<128x16xf32>
    %13 = math.log %12 : vector<128x16xf32>
    %14 = vector.broadcast %10 : f32 to vector<128x16xf32>
    %15 = arith.mulf %14, %13 : vector<128x16xf32>
    %cst_6 = arith.constant 0.000000e+00 : f32
    %16 = arith.subf %cst_6, %0 : f32
    %17 = math.log %9 : vector<128x16xf32>
    %18 = vector.broadcast %16 : f32 to vector<128x16xf32>
    %19 = arith.mulf %18, %17 : vector<128x16xf32>
    %20 = arith.subf %19, %15 : vector<128x16xf32>
    %21 = arith.mulf %4, %20 : vector<128x16xf32>
    %22 = arith.addf %15, %21 : vector<128x16xf32>
    %23 = vector.shape_cast %22 : vector<128x16xf32> to vector<16x8x16xf32>
    %cst_7 = arith.constant dense<0.000000e+00> : vector<8x16xf32>
    %24 = vector.multi_reduction <add>, %23, %cst_7 [0] : vector<16x8x16xf32> to vector<8x16xf32>
    %25 = vector.shape_cast %24 : vector<8x16xf32> to vector<1x8x16xf32>
    %c0_8 = arith.constant 0 : index
    %c0_9 = arith.constant 0 : index
    %c0_10 = arith.constant 0 : index
    %26 = vector.load %arg4[%c0_8, %c0_9, %c0_10] : memref<1x8x16xf32, #tpu.memory_space<vmem>>, vector<1x8x16xf32>
    tpu.vector_store %arg4[%c0_8, %c0_9, %c0_10], %25 {strides = array<i32>} : memref<1x8x16xf32, #tpu.memory_space<vmem>>, vector<1x8x16xf32>,
    return
  }
  func.func @transform_0(%arg0: i32) -> i32 {
    %c0_i32 = arith.constant 0 : i32
    %c0_i32_0 = arith.constant 0 : i32
    return %c0_i32 : i32
  }
  func.func @transform_1(%arg0: i32) -> (i32, i32) {
    %c0_i32 = arith.constant 0 : i32
    %c0_i32_0 = arith.constant 0 : i32
    return %arg0, %c0_i32 : i32, i32
  }
  func.func @transform_2(%arg0: i32) -> (i32, i32) {
    %c0_i32 = arith.constant 0 : i32
    %c0_i32_0 = arith.constant 0 : i32
    return %arg0, %c0_i32 : i32, i32
  }
  func.func @transform_3(%arg0: i32) -> (i32, i32, i32) {
    %c0_i32 = arith.constant 0 : i32
    %c0_i32_0 = arith.constant 0 : i32
    %c0_i32_1 = arith.constant 0 : i32
    return %arg0, %c0_i32, %c0_i32_0 : i32, i32, i32
  }
}

</mosaic_0001>

<bundles_post_ra>
// kernel: tpu_custom_call.1
= control target key start
LH: loop header
LB: loop body
LE: loop exit
PB: predicated region body
PF: predicated region fallthrough
CT: control target
= control target key end

     0   :  { %8 = vsyncpa [#allocation4], 0  ;;  %s735_s0 = inlined_call_operand.vmem [shape: f32[3], index: 0, kind: input, shape index: {}]   ;;  %s736_s1 = inlined_call_operand.vmem [shape: f32[128,16], index: 1, kind: input, shape index: {}]   ;;  %s737_s2 = inlined_call_operand.vmem [shape: f32[128,16], index: 2, kind: input, shape index: {}]   ;;  %s738_s3 = inlined_call_operand.hbm [shape: f32[1,8,16], index: 3, kind: output, shape index: {}]  }
   0x1   :  { %9 = vsyncpa [#allocation3], 0  ;;  %s16_s14 = sshll.u32 %s735_s0, 4  ;;  %s17_s14 = int_to_ptr.vmem [resolvable:$true] %s16_s14 }
   0x2   :  { %s378_s15 = scalar_lea.vmem %s17_s14, 16  ;;  %p383_p1 = scmp.lt.s32.totalorder %s17_s14, %s17_s14 }
   0x3   :  { %p379_p0 = scmp.ne.s32.totalorder %s17_s14, %s378_s15  ;;  %p384_p2 = scmp.lt.s32.totalorder %s378_s15, %s378_s15 }
   0x5   :  { %p385_p3 = por %p384_p2, %p383_p1 }
   0x7   :  { %p386_p4 = pnand %p385_p3, %p379_p0 }
   0x9   :  { %389 = shalt.err (!%p386_p4)
}
   0xa   :  { %s416_s16 = smov [#allocation2]  }
   0xb   :  { %19 = dma.vmem_to_smem %s17_s14, 16, %s416_s16, [#allocation4]  }
   0xc   :  { %412 = dma.done.wait [#allocation4], 16  }
   0xd   :  { %413 = vsyncadd [#allocation4], 4294967280 }
   0xe   :  { %27 = sfence }
   0xf   :  { %s311_s17 = sld [smem:[#allocation2 + $0x2]]  ;;  %v31_v0 = vld [vmem:[%s736_s1] sm:$0xff]  ;;  %v32_v2 = vld [vmem:[%s736_s1 + $0x8] sm:$0xff]  ;;  %v33_v3 = vld [vmem:[%s736_s1 + $0x10] sm:$0xff]  ;;  %s527_s0 = sld [smem:[#allocation2 + $0x1]]  ;;  %vm262_vm0 = vcmask 130048  }
  0x10   :  { %v34_v4 = vld [vmem:[%s736_s1 + $0x18] sm:$0xff]  ;;  %v35_v6 = vld [vmem:[%s736_s1 + $0x20] sm:$0xff]  ;;  %v36_v9 = vld [vmem:[%s736_s1 + $0x28] sm:$0xff]  ;;  %s534_s21 = sld [smem:[#allocation2]] }
  0x11   :  { %v37_v11 = vld [vmem:[%s736_s1 + $0x30] sm:$0xff]  ;;  %v38_v13 = vld [vmem:[%s736_s1 + $0x38] sm:$0xff]  ;;  %v39_v16 = vld [vmem:[%s736_s1 + $0x40] sm:$0xff] }
  0x12   :  { %v40_v28 = vld [vmem:[%s736_s1 + $0x48] sm:$0xff]  ;;  %v41_v33 = vld [vmem:[%s736_s1 + $0x50] sm:$0xff]  ;;  %v42_v38 = vld [vmem:[%s736_s1 + $0x58] sm:$0xff] }
  0x13   :  { %v43_v42 = vld [vmem:[%s736_s1 + $0x60] sm:$0xff]  ;;  %v44_v46 = vld [vmem:[%s736_s1 + $0x68] sm:$0xff]  ;;  %v45_v49 = vld [vmem:[%s736_s1 + $0x70] sm:$0xff] }
  0x14   :  { %v46_v60 = vld [vmem:[%s736_s1 + $0x78] sm:$0xff] }
  0x15   :  { %s63_s20 = ssub.f32 1.0, %s311_s17  ;;  %v444_v1 = vstv %s311_s17 }
  0x16   :  { %v65_v5 = vmax.f32 %v444_v1, %v31_v0  ;;  %v66_v7 = vmax.f32 %v444_v1, %v32_v2  ;;  %v67_v10 = vmax.f32 %v444_v1, %v33_v3  ;;  %v68_v12 = vmax.f32 %v444_v1, %v34_v4  ;;  %s98_s1 = ssub.f32 0.0, %s527_s0 }
  0x17   :  { %v460_v8 = vstv %s63_s20  ;;  %v69_v14 = vmax.f32 %v444_v1, %v35_v6  ;;  %v70_v17 = vmax.f32 %v444_v1, %v36_v9  ;;  %v71_v19 = vmax.f32 %v444_v1, %v37_v11  ;;  %s164_s24 = ssub.f32 0.0, %s534_s21 }
  0x18   :  { %v82_v15 = vmin.f32 %v460_v8, %v65_v5  ;;  %v83_v18 = vmin.f32 %v460_v8, %v66_v7  ;;  %v84_v20 = vmin.f32 %v460_v8, %v67_v10  ;;  %v72_v21 = vmax.f32 %v444_v1, %v38_v13 }
  0x19   :  { %v85_v22 = vmin.f32 %v460_v8, %v68_v12  ;;  %v73_v23 = vmax.f32 %v444_v1, %v39_v16  ;;  %v86_v24 = vmin.f32 %v460_v8, %v69_v14  ;;  %v87_v26 = vmin.f32 %v460_v8, %v70_v17 }
  0x1a   :  { %v99_v25 = vsub.f32 1.0, %v82_v15  ;;  %v100_v27 = vsub.f32 1.0, %v83_v18  ;;  %v491_v29 = vmin.f32 %v460_v8, %v71_v19  ;;  %v101_v30 = vsub.f32 1.0, %v84_v20 }
  0x1b   :  { %v494_v31 = vmin.f32 %v460_v8, %v72_v21  ;;  %v102_v32 = vsub.f32 1.0, %v85_v22  ;;  %v500_v34 = vmin.f32 %v460_v8, %v73_v23  ;;  %v103_v35 = vsub.f32 1.0, %v86_v24 }
  0x1c   :  { %314 = vlog2.f32 %v99_v25  ;;  %v74_v36 = vmax.f32 %v444_v1, %v40_v28  ;;  %v104_v37 = vsub.f32 1.0, %v87_v26  ;;  %v105_v39 = vsub.f32 1.0, %v491_v29 }
  0x1d   :  { %316 = vlog2.f32 %v100_v27  ;;  %v75_v40 = vmax.f32 %v444_v1, %v41_v33  ;;  %v106_v41 = vsub.f32 1.0, %v494_v31  ;;  %v107_v43 = vsub.f32 1.0, %v500_v34 }
  0x1e   :  { %318 = vlog2.f32 %v101_v30  ;;  %v76_v44 = vmax.f32 %v444_v1, %v42_v38  ;;  %v515_v45 = vmin.f32 %v460_v8, %v74_v36  ;;  %v77_v47 = vmax.f32 %v444_v1, %v43_v42 }
  0x1f   :  { %320 = vlog2.f32 %v102_v32  ;;  %v522_v48 = vmin.f32 %v460_v8, %v75_v40  ;;  %v78_v53 = vmax.f32 %v444_v1, %v44_v46  ;;  %v79_v55 = vmax.f32 %v444_v1, %v45_v49 }
  0x20   :  { %322 = vlog2.f32 %v103_v35  ;;  %v530_v50 = vmin.f32 %v460_v8, %v76_v44  ;;  %v108_v51 = vsub.f32 1.0, %v515_v45  ;;  %v538_v56 = vmin.f32 %v460_v8, %v77_v47 }
  0x21   :  { %324 = vlog2.f32 %v104_v37  ;;  %v109_v57 = vsub.f32 1.0, %v522_v48  ;;  %v546_v63 = vmin.f32 %v460_v8, %v78_v53  ;;  %v549_v2 = vmin.f32 %v460_v8, %v79_v55 }
  0x22   :  { %326 = vlog2.f32 %v105_v39  ;;  %v110_v61 = vsub.f32 1.0, %v530_v50  ;;  %v111_v3 = vsub.f32 1.0, %v538_v56  ;;  %v80_v5 = vmax.f32 %v444_v1, %v46_v60 }
  0x23   :  { %328 = vlog2.f32 %v106_v41  ;;  %v112_v9 = vsub.f32 1.0, %v546_v63  ;;  %v113_v11 = vsub.f32 1.0, %v549_v2  ;;  %v564_v16 = vstv %s98_s1 }
  0x24   :  { %330 = vlog2.f32 %v107_v43  ;;  %v561_v13 = vmin.f32 %v460_v8, %v80_v5  ;;  %v567_v23 = vstv %s164_s24 }
  0x25   :  { %332 = vlog2.f32 %v82_v15 }
  0x26   :  { %v315_v52 = vpop.eup %314  ;;  %334 = vlog2.f32 %v83_v18 }
  0x27   :  { %v317_v54 = vpop.eup %316  ;;  %336 = vlog2.f32 %v84_v20  ;;  %v116_v1 = vmul.f32 0.6931472, %v315_v52 }
  0x28   :  { %v319_v58 = vpop.eup %318  ;;  %338 = vlog2.f32 %v85_v22  ;;  %v118_v15 = vmul.f32 0.6931472, %v317_v54 }
  0x29   :  { %v321_v59 = vpop.eup %320  ;;  %340 = vlog2.f32 %v108_v51  ;;  %v120_v18 = vmul.f32 0.6931472, %v319_v58  ;;  %v571_v25 = vmul.f32 %v564_v16, %v116_v1  ;;  %v47_v51 = vld [vmem:[%s737_s2] sm:$0xff]  ;;  %v49_v58 = vld [vmem:[%s737_s2 + $0x10] sm:$0xff] }
  0x2a   :  { %v323_v62 = vpop.eup %322  ;;  %342 = vlog2.f32 %v86_v24  ;;  %v114_v24 = vsub.f32 1.0, %v561_v13  ;;  %v122_v27 = vmul.f32 0.6931472, %v321_v59  ;;  %v575_v28 = vmul.f32 %v564_v16, %v118_v15  ;;  %v51_v15 = vld [vmem:[%s737_s2 + $0x20] sm:$0xff] }
  0x2b   :  { %v325_v0 = vpop.eup %324  ;;  %344 = vlog2.f32 %v109_v57  ;;  %v579_v33 = vmul.f32 %v564_v16, %v120_v18  ;;  %v48_v57 = vld [vmem:[%s737_s2 + $0x8] sm:$0xff] }
  0x2c   :  { %v327_v4 = vpop.eup %326  ;;  %346 = vlog2.f32 %v87_v26  ;;  %v126_v32 = vmul.f32 0.6931472, %v325_v0  ;;  %v586_v43 = vmul.f32 %v564_v16, %v122_v27  ;;  %v52_v27 = vld [vmem:[%s737_s2 + $0x28] sm:$0xff] }
  0x2d   :  { %v329_v6 = vpop.eup %328  ;;  %348 = vlog2.f32 %v110_v61  ;;  %v128_v40 = vmul.f32 0.6931472, %v327_v4 }
  0x2e   :  { %v554_v7 = vpop.eup %330  ;;  %350 = vlog2.f32 %v491_v29  ;;  %v130_v41 = vmul.f32 0.6931472, %v329_v6  ;;  %v50_v6 = vld [vmem:[%s737_s2 + $0x18] sm:$0xff] }
  0x2f   :  { %v333_v10 = vpop.eup %332  ;;  %352 = vlog2.f32 %v111_v3  ;;  %v132_v59 = vmul.f32 0.6931472, %v554_v7  ;;  %v612_v61 = vmul.f32 %v564_v16, %v128_v40 }
  0x30   :  { %v335_v12 = vpop.eup %334  ;;  %354 = vlog2.f32 %v494_v31  ;;  %v166_v19 = vmul.f32 0.6931472, %v333_v10  ;;  %v124_v31 = vmul.f32 0.6931472, %v323_v62  ;;  %v615_v62 = vmul.f32 %v564_v16, %v130_v41 }
  0x31   :  { %v337_v14 = vpop.eup %336  ;;  %356 = vlog2.f32 %v500_v34  ;;  %v168_v21 = vmul.f32 0.6931472, %v335_v12 }
  0x32   :  { %v339_v17 = vpop.eup %338  ;;  %358 = vlog2.f32 %v112_v9  ;;  %v170_v22 = vmul.f32 0.6931472, %v337_v14  ;;  %v198_v34 = vmul.f32 %v567_v23, %v166_v19  ;;  %v591_v47 = vmul.f32 %v564_v16, %v124_v31 }
  0x33   :  { %v341_v20 = vpop.eup %340  ;;  %360 = vlog2.f32 %v113_v11  ;;  %v172_v29 = vmul.f32 0.6931472, %v339_v17  ;;  %v199_v37 = vmul.f32 %v567_v23, %v168_v21  ;;  %v630_v19 = vmul.f32 %v564_v16, %v132_v59  ;;  %v55_v59 = vld [vmem:[%s737_s2 + $0x40] sm:$0xff] }
  0x34   :  { %v343_v8 = vpop.eup %342  ;;  %362 = vlog2.f32 %v515_v45  ;;  %v200_v38 = vmul.f32 %v567_v23, %v170_v22  ;;  %v214_v49 = vsub.f32 %v198_v34, %v571_v25  ;;  %v134_v60 = vmul.f32 0.6931472, %v341_v20 }
  0x35   :  { %v345_v26 = vpop.eup %344  ;;  %364 = vlog2.f32 %v522_v48  ;;  %v174_v36 = vmul.f32 0.6931472, %v343_v8  ;;  %v201_v45 = vmul.f32 %v567_v23, %v172_v29  ;;  %v594_v48 = vmul.f32 %v564_v16, %v126_v32 }
  0x36   :  { %v347_v30 = vpop.eup %346  ;;  %366 = vlog2.f32 %v530_v50  ;;  %v215_v54 = vsub.f32 %v199_v37, %v575_v28  ;;  %v216_v55 = vsub.f32 %v200_v38, %v579_v33  ;;  %v136_v7 = vmul.f32 0.6931472, %v345_v26 }
  0x37   :  { %v349_v35 = vpop.eup %348  ;;  %368 = vlog2.f32 %v114_v24  ;;  %v176_v44 = vmul.f32 0.6931472, %v347_v30  ;;  %v202_v53 = vmul.f32 %v567_v23, %v174_v36  ;;  %v217_v4 = vsub.f32 %v201_v45, %v586_v43 }
  0x38   :  { %v351_v39 = vpop.eup %350  ;;  %370 = vlog2.f32 %v538_v56  ;;  %v230_v10 = vmul.f32 %v214_v49, %v47_v51  ;;  %v232_v14 = vmul.f32 %v216_v55, %v49_v58  ;;  %v138_v17 = vmul.f32 0.6931472, %v349_v35  ;;  %v53_v35 = vld [vmem:[%s737_s2 + $0x30] sm:$0xff] }
  0x39   :  { %v353_v42 = vpop.eup %352  ;;  %372 = vlog2.f32 %v546_v63  ;;  %v178_v52 = vmul.f32 0.6931472, %v351_v39  ;;  %v203_v3 = vmul.f32 %v567_v23, %v176_v44  ;;  %v218_v1 = vsub.f32 %v202_v53, %v591_v47 }
  0x3a   :  { %v355_v46 = vpop.eup %354  ;;  %374 = vlog2.f32 %v549_v2  ;;  %v231_v2 = vmul.f32 %v215_v54, %v48_v57  ;;  %v140_v18 = vmul.f32 0.6931472, %v353_v42  ;;  %v633_v20 = vmul.f32 %v564_v16, %v134_v60 }
  0x3b   :  { %v357_v50 = vpop.eup %356  ;;  %v180_v0 = vmul.f32 0.6931472, %v355_v46  ;;  %376 = vlog2.f32 %v561_v13  ;;  %v204_v12 = vmul.f32 %v567_v23, %v178_v52  ;;  %v219_v8 = vsub.f32 %v203_v3, %v594_v48 }
  0x3c   :  { %v359_v56 = vpop.eup %358  ;;  %v182_v9 = vmul.f32 0.6931472, %v357_v50  ;;  %v233_v24 = vmul.f32 %v217_v4, %v50_v6  ;;  %v641_v29 = vmul.f32 %v564_v16, %v136_v7  ;;  %v246_v32 = vadd.f32 %v230_v10, %v571_v25  ;;  %v56_v7 = vld [vmem:[%s737_s2 + $0x48] sm:$0xff] }
  0x3d   :  { %v361_v63 = vpop.eup %360  ;;  %v205_v22 = vmul.f32 %v567_v23, %v180_v0  ;;  %v220_v36 = vsub.f32 %v204_v12, %v612_v61  ;;  %v234_v37 = vmul.f32 %v218_v1, %v51_v15  ;;  %v247_v38 = vadd.f32 %v231_v2, %v575_v28  ;;  %v54_v28 = vld [vmem:[%s737_s2 + $0x38] sm:$0xff] }
  0x3e   :  { %v363_v5 = vpop.eup %362  ;;  %v206_v31 = vmul.f32 %v567_v23, %v182_v9  ;;  %v248_v39 = vadd.f32 %v232_v14, %v579_v33  ;;  %v142_v41 = vmul.f32 0.6931472, %v359_v56  ;;  %v144_v42 = vmul.f32 0.6931472, %v361_v63 }
  0x3f   :  { %v365_v11 = vpop.eup %364  ;;  %v184_v21 = vmul.f32 0.6931472, %v363_v5  ;;  %v652_v44 = vmul.f32 %v564_v16, %v138_v17  ;;  %v221_v46 = vsub.f32 %v205_v22, %v615_v62  ;;  %v235_v49 = vmul.f32 %v219_v8, %v52_v27 }
  0x40   :  { %v367_v13 = vpop.eup %366  ;;  %v186_v30 = vmul.f32 0.6931472, %v365_v11  ;;  %v249_v50 = vadd.f32 %v233_v24, %v586_v43  ;;  %v222_v52 = vsub.f32 %v206_v31, %v630_v19  ;;  %v263_v53 = vsel %vm262_vm0, %v246_v32, 0.0 }
  0x41   :  { %v369_v26 = vpop.eup %368  ;;  %v188_v45 = vmul.f32 0.6931472, %v367_v13  ;;  %v207_v25 = vmul.f32 %v567_v23, %v184_v21  ;;  %v236_v55 = vmul.f32 %v220_v36, %v53_v35  ;;  %v250_v56 = vadd.f32 %v234_v37, %v591_v47 }
  0x42   :  { %v371_v34 = vpop.eup %370  ;;  %v208_v33 = vmul.f32 %v567_v23, %v186_v30  ;;  %v264_v57 = vsel %vm262_vm0, %v247_v38, 0.0  ;;  %v266_v58 = vsel %vm262_vm0, %v248_v39, 0.0  ;;  %v160_v60 = vmul.f32 %v564_v16, %v140_v18 }
  0x43   :  { %v373_v40 = vpop.eup %372  ;;  %v190_v51 = vmul.f32 0.6931472, %v371_v34  ;;  %v209_v0 = vmul.f32 %v567_v23, %v188_v45  ;;  %v265_v3 = vadd.f32 %v264_v57, %v263_v53  ;;  %v223_v4 = vsub.f32 %v207_v25, %v633_v20  ;;  %v62_v53 = vld [vmem:[%s737_s2 + $0x78] sm:$0xff] }
  0x44   :  { %v375_v54 = vpop.eup %374  ;;  %v192_v63 = vmul.f32 0.6931472, %v373_v40  ;;  %v237_v5 = vmul.f32 %v221_v46, %v54_v28  ;;  %v251_v47 = vadd.f32 %v235_v49, %v594_v48  ;;  %v268_v6 = vsel %vm262_vm0, %v249_v50, 0.0  ;;  %v57_v48 = vld [vmem:[%s737_s2 + $0x50] sm:$0xff] }
  0x45   :  { %v377_v43 = vpop.eup %376  ;;  %v146_v9 = vmul.f32 0.6931472, %v369_v26  ;;  %v194_v10 = vmul.f32 0.6931472, %v375_v54  ;;  %v210_v11 = vmul.f32 %v567_v23, %v190_v51  ;;  %v267_v12 = vadd.f32 %v266_v58, %v265_v3 }
  0x46   :  { %v224_v1 = vsub.f32 %v208_v33, %v641_v29  ;;  %v238_v2 = vmul.f32 %v222_v52, %v55_v59  ;;  %v252_v14 = vadd.f32 %v236_v55, %v612_v61  ;;  %v270_v15 = vsel %vm262_vm0, %v250_v56, 0.0  ;;  %v58_v61 = vld [vmem:[%s737_s2 + $0x58] sm:$0xff] }
  0x47   :  { %v161_v17 = vmul.f32 %v564_v16, %v142_v41  ;;  %v196_v18 = vmul.f32 0.6931472, %v377_v43  ;;  %v211_v13 = vmul.f32 %v567_v23, %v192_v63  ;;  %v269_v21 = vadd.f32 %v268_v6, %v267_v12 }
  0x48   :  { %v225_v22 = vsub.f32 %v209_v0, %v652_v44  ;;  %v239_v8 = vmul.f32 %v223_v4, %v56_v7  ;;  %v253_v24 = vadd.f32 %v237_v5, %v615_v62  ;;  %v272_v26 = vsel %vm262_vm0, %v251_v47, 0.0  ;;  %v59_v62 = vld [vmem:[%s737_s2 + $0x60] sm:$0xff] }
  0x49   :  { %v162_v27 = vmul.f32 %v564_v16, %v144_v42  ;;  %v212_v30 = vmul.f32 %v567_v23, %v194_v10  ;;  %v271_v31 = vadd.f32 %v270_v15, %v269_v21  ;;  %v226_v32 = vsub.f32 %v210_v11, %v160_v60 }
  0x4a   :  { %v240_v34 = vmul.f32 %v224_v1, %v57_v48  ;;  %v254_v35 = vadd.f32 %v238_v2, %v630_v19  ;;  %v274_v36 = vsel %vm262_vm0, %v252_v14, 0.0  ;;  %v163_v37 = vmul.f32 %v564_v16, %v146_v9  ;;  %v60_v19 = vld [vmem:[%s737_s2 + $0x68] sm:$0xff] }
  0x4b   :  { %v213_v38 = vmul.f32 %v567_v23, %v196_v18  ;;  %v273_v39 = vadd.f32 %v272_v26, %v271_v31  ;;  %v227_v40 = vsub.f32 %v211_v13, %v161_v17  ;;  %v241_v41 = vmul.f32 %v225_v22, %v58_v61  ;;  %v61_v23 = vld [vmem:[%s737_s2 + $0x70] sm:$0xff]  ;;  %s417_s2 = smov [#allocation5]  }
  0x4c   :  { %v255_v42 = vadd.f32 %v239_v8, %v633_v20  ;;  %v276_v45 = vsel %vm262_vm0, %v253_v24, 0.0  ;;  %v228_v46 = vsub.f32 %v212_v30, %v162_v27  ;;  %v242_v49 = vmul.f32 %v226_v32, %v59_v62  ;;  %s301_s28 = sshll.u32 %s417_s2, 4  ;;  %s302_s28 = int_to_ptr.vmem [resolvable:$true] %s301_s28 }
  0x4d   :  { %v275_v25 = vadd.f32 %v274_v36, %v273_v39  ;;  %v256_v50 = vadd.f32 %v240_v34, %v641_v29  ;;  %v278_v16 = vsel %vm262_vm0, %v254_v35, 0.0  ;;  %v229_v51 = vsub.f32 %v213_v38, %v163_v37  ;;  %s390_s29 = scalar_lea.vmem %s302_s28, 128  ;;  %p395_p6 = scmp.lt.s32.totalorder %s302_s28, %s302_s28 }
  0x4e   :  { %v243_v20 = vmul.f32 %v227_v40, %v60_v19  ;;  %v257_v33 = vadd.f32 %v241_v41, %v652_v44  ;;  %v280_v52 = vsel %vm262_vm0, %v255_v42, 0.0  ;;  %v244_v55 = vmul.f32 %v228_v46, %v61_v23  ;;  %p391_p5 = scmp.ne.s32.totalorder %s302_s28, %s390_s29  ;;  %p396_p7 = scmp.lt.s32.totalorder %s390_s29, %s390_s29 }
  0x4f   :  { %v277_v28 = vadd.f32 %v276_v45, %v275_v25  ;;  %v258_v29 = vadd.f32 %v242_v49, %v160_v60  ;;  %v282_v56 = vsel %vm262_vm0, %v256_v50, 0.0  ;;  %v245_v58 = vmul.f32 %v229_v51, %v62_v53 }
  0x50   :  { %v259_v43 = vadd.f32 %v243_v20, %v161_v17  ;;  %v284_v59 = vsel %vm262_vm0, %v257_v33, 0.0  ;;  %v260_v0 = vadd.f32 %v244_v55, %v162_v27  ;;  %p397_p8 = por %p396_p7, %p395_p6 }
  0x51   :  { %v279_v54 = vadd.f32 %v278_v16, %v277_v28  ;;  %v286_v44 = vsel %vm262_vm0, %v258_v29, 0.0  ;;  %v261_v4 = vadd.f32 %v245_v58, %v163_v37 }
  0x52   :  { %v288_v5 = vsel %vm262_vm0, %v259_v43, 0.0  ;;  %v290_v6 = vsel %vm262_vm0, %v260_v0, 0.0  ;;  %p398_p9 = pnand %p397_p8, %p391_p5 }
  0x53   :  { %v281_v57 = vadd.f32 %v280_v52, %v279_v54  ;;  %v292_v60 = vsel %vm262_vm0, %v261_v4, 0.0 }
  0x55   :  { %v283_v63 = vadd.f32 %v282_v56, %v281_v57 }
  0x57   :  { %v285_v3 = vadd.f32 %v284_v59, %v283_v63 }
  0x59   :  { %v287_v47 = vadd.f32 %v286_v44, %v285_v3 }
  0x5b   :  { %v289_v7 = vadd.f32 %v288_v5, %v287_v47 }
  0x5d   :  { %v291_v9 = vadd.f32 %v290_v6, %v289_v7 }
  0x5f   :  { %v293_v10 = vadd.f32 %v292_v60, %v291_v9 }
  0x61   :  { %294 = vst.msk [vmem:[#allocation5] sm:$0xff] %vm262_vm0, %v293_v10 }
  0x62   :  { %401 = shalt.err (!%p398_p9)
}
  0x63   :  { %s402_s5 = scalar_lea.hbm %s738_s3, 128 }
  0x64   :  { %p403_p10 = scmp.ne.s32.totalorder %s738_s3, %s402_s5  ;;  %p406_p11 = scmp.lt.u32.totalorder %s402_s5, %s738_s3 }
  0x66   :  { %p408_p12 = pnand %p406_p11, %p403_p10 }
  0x68   :  { %411 = shalt.err (!%p408_p12)
}
  0x69   :  { %304 = dma.vmem_to_hbm [thread:$0]  %s302_s28, 128, %s738_s3, [#allocation3]  }
  0x6a   :  { %414 = dma.done.wait [#allocation3], 128  }
  0x6b   :  { %415 = vsyncadd [#allocation3], 4294967168 }
  0x6c   :  { %308 = vsyncpa [#allocation3], 1 }
  0x6d   :  { %309 = vsyncpa [#allocation4], 1 }

</bundles_post_ra>
